<compile_context>
chip_gen: v6e
topology: v6e:2x2x1
jax: 0.10.0
libtpu: 0.0.40
codegen_flags: <defaults>
</compile_context>

<pallas_src>
import jax
import jax.numpy as jnp
from jax.experimental import pallas as pl
from jax.experimental.pallas import tpu as pltpu


def _copy_kernel(x_ref, o_ref):
    # Pass-through of the current lane-dense tile (pure vld/vst, no compute).
    o_ref[...] = x_ref[...]


def _min_sublanes(dtype) -> int:
    # Minimum sublane tiling: 8 for 32-bit dtypes, 16 for 16-bit, 32 for 8-bit.
    return max(8, 32 // jnp.dtype(dtype).itemsize)


def _pick_layout(n: int, dtype):
    """Pick (cols, tile_rows, rows_padded) for a lane-dense 2-D view of n elems."""
    itemsize = jnp.dtype(dtype).itemsize
    min_rows = _min_sublanes(dtype)

    # Lane-dense last dim: largest power-of-two multiple of 128 (capped at
    # 2048) that the data can still fill with at least `min_rows` rows.
    cols = 128
    limit = max(n, 128 * min_rows)
    while cols * 2 <= 2048 and (cols * 2) * min_rows <= limit:
        cols *= 2

    rows = pl.cdiv(n, cols)

    # ~2 MiB tiles (see header comment for the VMEM budget reasoning).
    target_bytes = 2 * 1024 * 1024
    target_rows = max(
        min_rows, (target_bytes // (cols * itemsize)) // min_rows * min_rows
    )
    tile_rows = min(target_rows, pl.cdiv(rows, min_rows) * min_rows)
    rows_padded = pl.cdiv(rows, tile_rows) * tile_rows
    return cols, tile_rows, rows_padded


@jax.jit
def _identity_pallas(x):
    """Materialized identity copy through a tiled Pallas kernel."""
    orig_shape = x.shape
    n = x.size
    if n == 0:
        return x  # empty tensor: nothing to copy

    cols, tile_rows, rows_padded = _pick_layout(n, x.dtype)
    padded_n = rows_padded * cols

    flat = x.reshape(-1)
    if padded_n != n:  # rare ragged case only
        flat = jnp.pad(flat, (0, padded_n - n))
    x2d = flat.reshape(rows_padded, cols)

    out2d = pl.pallas_call(
        _copy_kernel,
        out_shape=jax.ShapeDtypeStruct((rows_padded, cols), x.dtype),
        grid=(rows_padded // tile_rows,),
        in_specs=[pl.BlockSpec((tile_rows, cols), lambda i: (i, 0))],
        out_specs=pl.BlockSpec((tile_rows, cols), lambda i: (i, 0)),
        compiler_params=pltpu.CompilerParams(
            dimension_semantics=("parallel",),
        ),
    )(x2d)

    out = out2d
    if padded_n != n:
        out = out2d.reshape(-1)[:n]
    return out.reshape(orig_shape)


def identity_forward(x, edge_index=None, *, use_kernel=False):
    """Identity.forward(x, edge_index=None) -> x.

    Default path is a true no-op (returns x).  Set use_kernel=True to force a
    materialized copy through the Pallas kernel.
    """
    del edge_index  # unused, matches the PyTorch module semantics
    if not use_kernel:
        return x
    return _identity_pallas(x)


if __name__ == "__main__":
    key = jax.random.PRNGKey(0)
    # NCHW input consistent with a conv-style GCN operation slot.
    x = jax.random.normal(key, (2, 4, 16, 16), dtype=jnp.float32)

    # 1) Default forward: semantic no-op, returns x untouched.
    y = identity_forward(x)
    jax.block_until_ready(y)
    assert y is x

    # 2) Explicit Pallas copy path (evenly tiling f32 case, no padding).
    y_k = identity_forward(x, use_kernel=True)
    jax.block_until_ready(y_k)
    assert y_k.shape == x.shape and y_k.dtype == x.dtype
    assert bool(jnp.all(y_k == x))

    # 3) Ragged bf16 case to exercise dtype-aware tiling + pad fallback.
    x2 = jax.random.normal(jax.random.PRNGKey(1), (3, 5, 7, 9), dtype=jnp.bfloat16)
    y2 = identity_forward(x2, use_kernel=True)
    jax.block_until_ready(y2)
    assert y2.shape == x2.shape and y2.dtype == x2.dtype
    assert bool(jnp.all(y2 == x2))

    print("KERNEL_OK")
</pallas_src>

<mosaic_0001>
module attributes {stable_mosaic.version = 11 : i64} {
  func.func @_copy_kernel(%arg0: i32, %arg1: memref<8x256xf32, #tpu.memory_space<vmem>>, %arg2: memref<8x256xf32, #tpu.memory_space<vmem>>) attributes {dimension_semantics = [#tpu.dimension_semantics<parallel>], iteration_bounds = array<i64: 1>, scalar_prefetch = 0 : i64, scratch_operands = 0 : i64, tpu.core_type = #tpu.core_type<tc>, window_params = [{transform_indices = @transform_0, window_bounds = array<i64: 8, 256>}, {transform_indices = @transform_1, window_bounds = array<i64: 8, 256>}]} {
    %c0 = arith.constant 0 : index
    %c0_0 = arith.constant 0 : index
    %0 = vector.load %arg1[%c0, %c0_0] : memref<8x256xf32, #tpu.memory_space<vmem>>, vector<8x256xf32>
    %c0_1 = arith.constant 0 : index
    %c0_2 = arith.constant 0 : index
    %1 = vector.load %arg2[%c0_1, %c0_2] : memref<8x256xf32, #tpu.memory_space<vmem>>, vector<8x256xf32>
    tpu.vector_store %arg2[%c0_1, %c0_2], %0 {strides = array<i32>} : memref<8x256xf32, #tpu.memory_space<vmem>>, vector<8x256xf32>,
    return
  }
  func.func @transform_0(%arg0: i32) -> (i32, i32) {
    %c0_i32 = arith.constant 0 : i32
    %c0_i32_0 = arith.constant 0 : i32
    return %arg0, %c0_i32 : i32, i32
  }
  func.func @transform_1(%arg0: i32) -> (i32, i32) {
    %c0_i32 = arith.constant 0 : i32
    %c0_i32_0 = arith.constant 0 : i32
    return %arg0, %c0_i32 : i32, i32
  }
}

</mosaic_0001>

<bundles_post_ra>
// kernel: _identity_pallas.1
= control target key start
LH: loop header
LB: loop body
LE: loop exit
PB: predicated region body
PF: predicated region fallthrough
CT: control target
= control target key end

     0   :  { %s38_s0 = inlined_call_operand.vmem [shape: f32[8,256], index: 0, kind: input, shape index: {}]   ;;  %s39_s1 = inlined_call_operand.vmem [shape: f32[8,256], index: 1, kind: output, shape index: {}]  }
   0x1   :  { %v8_v0 = vld [vmem:[%s38_s0] sm:$0xff]  ;;  %v9_v1 = vld [vmem:[%s38_s0 + $0x8] sm:$0xff] }
   0x2   :  { %10 = vst [vmem:[%s39_s1] sm:$0xff] %v8_v0  ;;  %11 = vst [vmem:[%s39_s1 + $0x8] sm:$0xff] %v9_v1 }

</bundles_post_ra>
